<compile_context>
chip_gen: v7x
topology: tpu7x:2x2x1
jax: 0.10.0
libtpu: 0.0.40
codegen_flags: <defaults>
</compile_context>

<pallas_src>
import functools

import jax
import jax.numpy as jnp
from jax.experimental import pallas as pl
from jax.experimental.pallas import tpu as pltpu


def _round_up(x, m):
    return (x + m - 1) // m * m


# ---------------------------------------------------------------------------
# Generation-aware hardware queries (with safe fallbacks).
# ---------------------------------------------------------------------------
def _tpu_info():
    try:
        return pltpu.get_tpu_info()
    except Exception:
        return None


def _vmem_capacity_bytes(info):
    if info is not None:
        for attr in ("vmem_capacity_bytes", "vmem_size_bytes", "vmem_bytes"):
            v = getattr(info, attr, None)
            if v:
                try:
                    return int(v)
                except Exception:
                    pass
    return 64 << 20  # conservative (v7x-sized) default for tile budgeting


def _num_tensorcores(info):
    if info is None:
        return 1
    for attr in ("num_tensorcores", "tensor_cores_per_chip", "cores_per_chip",
                 "num_cores"):
        v = getattr(info, attr, None)
        if v:
            try:
                return int(v)
            except Exception:
                pass
    # Heuristic: 64 MiB VMEM per TensorCore => v7x => 2 TCs per chip.
    return 2 if _vmem_capacity_bytes(info) <= (64 << 20) else 1


# ---------------------------------------------------------------------------
# Kernel body.
# ---------------------------------------------------------------------------
def _expert_kernel(x_ref, w13_ref, w2_ref, o_ref, acc_ref, *, ffn_tile):
    # x_ref:   (tm, hidden)           token tile (resident across ffn steps)
    # w13_ref: (hidden, 2*ffn_tile)   fused [W1^T | W3^T] tile for step j
    # w2_ref:  (ffn_tile, hidden)     W2^T tile for step j
    # o_ref:   (tm, hidden)
    # acc_ref: (tm, hidden) f32       down-projection accumulator
    j = pl.program_id(1)

    @pl.when(j == 0)
    def _():
        acc_ref[...] = jnp.zeros_like(acc_ref)

    w13 = w13_ref[...]
    x = x_ref[...].astype(w13.dtype)          # cast in-kernel, not in the wrapper
    # Fused gate/up projection: one MXU matmul covers both W1 and W3 tiles.
    h13 = jnp.dot(x, w13, preferred_element_type=jnp.float32)
    h1 = h13[:, :ffn_tile]
    h3 = h13[:, ffn_tile:]
    gated = jnp.maximum(h1, 0.0) * h3                       # ReLU(w1 x) * (w3 x)
    acc_ref[...] += jnp.dot(gated.astype(w2_ref.dtype), w2_ref[...],
                            preferred_element_type=jnp.float32)

    @pl.when(j == pl.num_programs(1) - 1)
    def _():
        o_ref[...] = acc_ref[...].astype(o_ref.dtype)


# ---------------------------------------------------------------------------
# Tiling heuristics.
# ---------------------------------------------------------------------------
def select_ffn_tile(ffn, hidden, w_itemsize, *, token_tile=512, x_itemsize=4,
                    vmem_capacity=None):
    """Largest power-of-two ffn tile whose double-buffered weight slices fit
    next to the token-resident tiles inside the generation's VMEM."""
    if vmem_capacity is None:
        vmem_capacity = _vmem_capacity_bytes(_tpu_info())
    # Double-buffered x/out tiles + f32 accumulator that must coexist with the
    # weight double-buffers.
    token_bytes = 2 * token_tile * hidden * (2 * x_itemsize) + token_tile * hidden * 4
    weight_budget = max((int(vmem_capacity * 0.70) - token_bytes) // 2,
                        3 * hidden * 128 * w_itemsize)
    max_tf = max(128, weight_budget // (3 * hidden * w_itemsize))
    tf = 128
    for cand in (2048, 1024, 512, 256, 128):
        if cand <= max_tf:
            tf = cand
            break
    return min(tf, _round_up(ffn, 128))


def select_token_tile(T, row_align, *, token_tile=512, min_tiles=1):
    """Pick (tm, T_pad): sublane-aligned, minimal padding, >= min_tiles tiles."""
    T_align = _round_up(max(T, 1), row_align)
    cands = []
    t = token_tile
    while t > row_align:
        cands.append(t)
        t //= 2
    cands.append(row_align)
    best_key, best = None, None
    for tm in cands:
        tm = _round_up(tm, row_align)
        T_pad = _round_up(T_align, tm)
        n = T_pad // tm
        key = (n < min_tiles, T_pad - T, -tm)
        if best_key is None or key < best_key:
            best_key, best = key, (tm, T_pad)
    return best


# ---------------------------------------------------------------------------
# One-time weight preparation (do at load time, NOT per forward call).
# ---------------------------------------------------------------------------
def prepare_expert_weights(w1, w2, w3, *, compute_dtype=jnp.bfloat16,
                           ffn_tile=None, token_tile=512, x_itemsize=4):
    """w1, w3: (ffn, hidden), w2: (hidden, ffn) -- PyTorch nn.Linear layout.

    Returns (w13, w2t, ffn_tile):
      w13: (ffn_pad // ffn_tile, hidden, 2*ffn_tile)  fused [W1^T | W3^T] tiles
      w2t: (ffn_pad, hidden)                          W2^T (zero-padded rows)
    Zero-padding the intermediate dim is exact: padded columns produce
    gated == 0 and their W2 rows are zero.
    """
    ffn, hidden = w1.shape
    dtype = jnp.dtype(compute_dtype)
    if ffn_tile is None:
        ffn_tile = select_ffn_tile(ffn, hidden, dtype.itemsize,
                                   token_tile=token_tile, x_itemsize=x_itemsize)
    ffn_pad = _round_up(ffn, ffn_tile)
    n_tiles = ffn_pad // ffn_tile

    w1t = w1.T.astype(dtype)                                  # (hidden, ffn)
    w3t = w3.T.astype(dtype)
    w2t = w2.T.astype(dtype)                                  # (ffn, hidden)
    if ffn_pad != ffn:
        pad = ffn_pad - ffn
        w1t = jnp.pad(w1t, ((0, 0), (0, pad)))
        w3t = jnp.pad(w3t, ((0, 0), (0, pad)))
        w2t = jnp.pad(w2t, ((0, pad), (0, 0)))

    w1b = w1t.reshape(hidden, n_tiles, ffn_tile).transpose(1, 0, 2)
    w3b = w3t.reshape(hidden, n_tiles, ffn_tile).transpose(1, 0, 2)
    w13 = jnp.concatenate([w1b, w3b], axis=-1)                # (nt, hidden, 2*tf)
    return w13, w2t, ffn_tile


# ---------------------------------------------------------------------------
# Forward.
# ---------------------------------------------------------------------------
def expert_forward(x, w13, w2t, ffn_tile, *, token_tile=512):
    """x: (T, hidden). w13/w2t from prepare_expert_weights."""
    T, hidden = x.shape
    n_f, h2, two_tf = w13.shape
    assert h2 == hidden and two_tf == 2 * ffn_tile
    ffn_pad = w2t.shape[0]
    assert ffn_pad == n_f * ffn_tile

    info = _tpu_info()
    vmem_cap = _vmem_capacity_bytes(info)
    n_cores = _num_tensorcores(info)

    w_dtype = w13.dtype
    out_dtype = x.dtype
    w_isize = jnp.dtype(w_dtype).itemsize
    x_isize = jnp.dtype(x.dtype).itemsize
    o_isize = jnp.dtype(out_dtype).itemsize

    # Token tiling: bf16 activations pack 16 rows per vreg, f32 pack 8.
    row_align = 16 if x_isize <= 2 else 8
    min_tiles = n_cores if T >= 2 * row_align else 1   # megacore coverage (v7x)
    tm, T_pad = select_token_tile(T, row_align, token_tile=token_tile,
                                  min_tiles=min_tiles)
    xp = jnp.pad(x, ((0, T_pad - T), (0, 0))) if T_pad != T else x

    grid = (T_pad // tm, n_f)

    # VMEM budget: double-buffered x / weight / out tiles + f32 accumulator.
    per_step_w = 3 * hidden * ffn_tile * w_isize              # w13 + w2 slices
    vmem_need = (2 * (per_step_w + tm * hidden * (x_isize + o_isize))
                 + tm * hidden * 4)
    usable = int(vmem_cap * 0.85)        # headroom for Mosaic internal scratch
    vmem_limit = int(min(max(int(vmem_need * 1.25) + (2 << 20), 32 << 20), usable))
    vmem_limit = max(vmem_limit, vmem_need + (1 << 20))

    cost = pl.CostEstimate(
        flops=6 * T_pad * hidden * ffn_pad,
        transcendentals=0,
        bytes_accessed=(xp.size * x_isize
                        + T_pad * hidden * o_isize
                        + (w13.size + w2t.size) * w_isize * grid[0]),
    )

    kernel = functools.partial(_expert_kernel, ffn_tile=ffn_tile)

    out = pl.pallas_call(
        kernel,
        out_shape=jax.ShapeDtypeStruct((T_pad, hidden), out_dtype),
        grid_spec=pltpu.PrefetchScalarGridSpec(
            num_scalar_prefetch=0,
            grid=grid,
            in_specs=[
                pl.BlockSpec((tm, hidden), lambda i, j: (i, 0)),           # x tile
                pl.BlockSpec((None, hidden, 2 * ffn_tile),
                             lambda i, j: (j, 0, 0)),                      # [W1|W3]^T
                pl.BlockSpec((ffn_tile, hidden), lambda i, j: (j, 0)),     # W2^T
            ],
            out_specs=pl.BlockSpec((tm, hidden), lambda i, j: (i, 0)),
            scratch_shapes=[pltpu.VMEM((tm, hidden), jnp.float32)],
        ),
        compiler_params=pltpu.CompilerParams(
            dimension_semantics=("parallel", "arbitrary"),
            vmem_limit_bytes=vmem_limit,
        ),
        cost_estimate=cost,
    )(xp, w13, w2t)

    return out[:T] if T_pad != T else out


def expert_reference(x, w1, w2, w3):
    h = jnp.maximum(x @ w1.T, 0.0) * (x @ w3.T)
    return h @ w2.T


if __name__ == "__main__":
    # Small shapes consistent with the module: tokens=8, hidden=32, ffn=64.
    hidden_size = 32
    intermediate_size = 64
    seq = 8

    key = jax.random.PRNGKey(0)
    kx, k1, k2, k3 = jax.random.split(key, 4)

    x = jax.random.normal(kx, (seq, hidden_size), dtype=jnp.float32)
    # nn.Linear weight layout: (out_features, in_features).
    w1 = jax.random.normal(k1, (intermediate_size, hidden_size), dtype=jnp.float32) * 0.05
    w2 = jax.random.normal(k2, (hidden_size, intermediate_size), dtype=jnp.float32) * 0.05
    w3 = jax.random.normal(k3, (intermediate_size, hidden_size), dtype=jnp.float32) * 0.05

    ref = expert_reference(x, w1, w2, w3)

    # f32 compute path (tight correctness check only; production default is bf16).
    w13, w2t, tf = prepare_expert_weights(w1, w2, w3, compute_dtype=jnp.float32)
    out = jax.block_until_ready(expert_forward(x, w13, w2t, tf))
    assert out.shape == (seq, hidden_size)
    assert jnp.allclose(out, ref, atol=1e-5, rtol=1e-5), "f32 mismatch vs reference"

    # bf16 compute path (default / MXU-friendly; loose tolerance by design).
    w13b, w2tb, tfb = prepare_expert_weights(w1, w2, w3, x_itemsize=2)
    out_bf16 = jax.block_until_ready(
        expert_forward(x.astype(jnp.bfloat16), w13b, w2tb, tfb))
    assert out_bf16.shape == (seq, hidden_size)
    assert jnp.allclose(out_bf16.astype(jnp.float32), ref, atol=5e-2, rtol=5e-2), \
        "bf16 mismatch vs reference"

    print("KERNEL_OK")
</pallas_src>

<mosaic_0001>
module attributes {stable_mosaic.version = 11 : i64} {
  func.func @_expert_kernel(%arg0: i32, %arg1: i32, %arg2: memref<8x32xf32, #tpu.memory_space<vmem>>, %arg3: memref<1x32x256xf32, #tpu.memory_space<vmem>>, %arg4: memref<128x32xf32, #tpu.memory_space<vmem>>, %arg5: memref<8x32xf32, #tpu.memory_space<vmem>>, %arg6: memref<8x32xf32, #tpu.memory_space<vmem>>) attributes {dimension_semantics = [#tpu.dimension_semantics<parallel>, #tpu.dimension_semantics<arbitrary>], iteration_bounds = array<i64: 1, 1>, scalar_prefetch = 0 : i64, scratch_operands = 1 : i64, tpu.core_type = #tpu.core_type<tc>, window_params = [{transform_indices = @transform_0, window_bounds = array<i64: 8, 32>}, {transform_indices = @transform_1, window_bounds = array<i64: 1, 32, 256>}, {transform_indices = @transform_2, window_bounds = array<i64: 128, 32>}, {transform_indices = @transform_3, window_bounds = array<i64: 8, 32>}]} {
    %c0_i32 = arith.constant 0 : i32
    %0 = arith.cmpi eq, %arg1, %c0_i32 : i32
    %1 = arith.extui %0 : i1 to i32
    %c0_i32_0 = arith.constant 0 : i32
    %2 = arith.cmpi ne, %1, %c0_i32_0 : i32
    scf.if %2 {
      %cst_15 = arith.constant 0.000000e+00 : f32
      %20 = vector.broadcast %cst_15 : f32 to vector<8x32xf32>
      %c0_16 = arith.constant 0 : index
      %c0_17 = arith.constant 0 : index
      %21 = vector.load %arg6[%c0_16, %c0_17] : memref<8x32xf32, #tpu.memory_space<vmem>>, vector<8x32xf32>
      tpu.vector_store %arg6[%c0_16, %c0_17], %20 {strides = array<i32>} : memref<8x32xf32, #tpu.memory_space<vmem>>, vector<8x32xf32>,
    } else {
    }
    %c0 = arith.constant 0 : index
    %c0_1 = arith.constant 0 : index
    %c0_2 = arith.constant 0 : index
    %3 = vector.load %arg3[%c0, %c0_1, %c0_2] : memref<1x32x256xf32, #tpu.memory_space<vmem>>, vector<1x32x256xf32>
    %4 = vector.shape_cast %3 : vector<1x32x256xf32> to vector<32x256xf32>
    %c0_3 = arith.constant 0 : index
    %c0_4 = arith.constant 0 : index
    %5 = vector.load %arg2[%c0_3, %c0_4] : memref<8x32xf32, #tpu.memory_space<vmem>>, vector<8x32xf32>
    %cst = arith.constant dense<0.000000e+00> : vector<8x256xf32>
    %6 = tpu.matmul %5, %4, %cst {dimension_numbers = #tpu.dot_dimension_numbers<[1], [0], [0], [1], [0, 0, 1, 1], [], []>} : vector<8x32xf32>, vector<32x256xf32>, vector<8x256xf32> -> vector<8x256xf32>
    %7 = vector.extract_strided_slice %6 {offsets = [0, 0], sizes = [8, 128], strides = [1, 1]} : vector<8x256xf32> to vector<8x128xf32>
    %8 = vector.extract_strided_slice %6 {offsets = [0, 128], sizes = [8, 128], strides = [1, 1]} : vector<8x256xf32> to vector<8x128xf32>
    %cst_5 = arith.constant 0.000000e+00 : f32
    %9 = vector.broadcast %cst_5 : f32 to vector<8x128xf32>
    %10 = arith.maximumf %7, %9 : vector<8x128xf32>
    %11 = arith.mulf %10, %8 : vector<8x128xf32>
    %c0_6 = arith.constant 0 : index
    %c0_7 = arith.constant 0 : index
    %12 = vector.load %arg6[%c0_6, %c0_7] : memref<8x32xf32, #tpu.memory_space<vmem>>, vector<8x32xf32>
    %c0_8 = arith.constant 0 : index
    %c0_9 = arith.constant 0 : index
    %13 = vector.load %arg4[%c0_8, %c0_9] : memref<128x32xf32, #tpu.memory_space<vmem>>, vector<128x32xf32>
    %cst_10 = arith.constant dense<0.000000e+00> : vector<8x32xf32>
    %14 = tpu.matmul %11, %13, %cst_10 {dimension_numbers = #tpu.dot_dimension_numbers<[1], [0], [0], [1], [0, 0, 1, 1], [], []>} : vector<8x128xf32>, vector<128x32xf32>, vector<8x32xf32> -> vector<8x32xf32>
    %15 = arith.addf %12, %14 : vector<8x32xf32>
    %c0_11 = arith.constant 0 : index
    %c0_12 = arith.constant 0 : index
    %16 = vector.load %arg6[%c0_11, %c0_12] : memref<8x32xf32, #tpu.memory_space<vmem>>, vector<8x32xf32>
    tpu.vector_store %arg6[%c0_11, %c0_12], %15 {strides = array<i32>} : memref<8x32xf32, #tpu.memory_space<vmem>>, vector<8x32xf32>,
    %c0_i32_13 = arith.constant 0 : i32
    %17 = arith.cmpi eq, %arg1, %c0_i32_13 : i32
    %18 = arith.extui %17 : i1 to i32
    %c0_i32_14 = arith.constant 0 : i32
    %19 = arith.cmpi ne, %18, %c0_i32_14 : i32
    scf.if %19 {
      %c0_15 = arith.constant 0 : index
      %c0_16 = arith.constant 0 : index
      %20 = vector.load %arg6[%c0_15, %c0_16] : memref<8x32xf32, #tpu.memory_space<vmem>>, vector<8x32xf32>
      %c0_17 = arith.constant 0 : index
      %c0_18 = arith.constant 0 : index
      %21 = vector.load %arg5[%c0_17, %c0_18] : memref<8x32xf32, #tpu.memory_space<vmem>>, vector<8x32xf32>
      tpu.vector_store %arg5[%c0_17, %c0_18], %20 {strides = array<i32>} : memref<8x32xf32, #tpu.memory_space<vmem>>, vector<8x32xf32>,
    } else {
    }
    return
  }
  func.func @transform_0(%arg0: i32, %arg1: i32) -> (i32, i32) {
    %c0_i32 = arith.constant 0 : i32
    %c0_i32_0 = arith.constant 0 : i32
    return %arg0, %c0_i32 : i32, i32
  }
  func.func @transform_1(%arg0: i32, %arg1: i32) -> (i32, i32, i32) {
    %c0_i32 = arith.constant 0 : i32
    %c0_i32_0 = arith.constant 0 : i32
    %c0_i32_1 = arith.constant 0 : i32
    return %arg1, %c0_i32, %c0_i32_0 : i32, i32, i32
  }
  func.func @transform_2(%arg0: i32, %arg1: i32) -> (i32, i32) {
    %c0_i32 = arith.constant 0 : i32
    %c0_i32_0 = arith.constant 0 : i32
    return %arg1, %c0_i32 : i32, i32
  }
  func.func @transform_3(%arg0: i32, %arg1: i32) -> (i32, i32) {
    %c0_i32 = arith.constant 0 : i32
    %c0_i32_0 = arith.constant 0 : i32
    return %arg0, %c0_i32 : i32, i32
  }
}

</mosaic_0001>

<bundles_post_ra>
// kernel: tpu_custom_call.1
= control target key start
LH: loop header
LB: loop body
LE: loop exit
PB: predicated region body
PF: predicated region fallthrough
CT: control target
= control target key end

     0   :  { %vm19_vm0 = vcmask 261120   ;;  %v328_v7 = vmov 0.0   ;;  %v329_v8 = vmov 0.0|0.0   ;;  %s443_s0 = inlined_call_operand.vmem [shape: f32[8,32], index: 0, kind: input, shape index: {}]   ;;  %s444_s1 = inlined_call_operand.vmem [shape: f32[1,32,256], index: 1, kind: input, shape index: {}]   ;;  %s445_s2 = inlined_call_operand.vmem [shape: f32[128,32], index: 2, kind: input, shape index: {}]   ;;  %s446_s3 = inlined_call_operand.hbm [shape: f32[8,32], index: 3, kind: output, shape index: {}]  }
   0x1   :  { %v22_v0 = vld [vmem:[%s444_s1 + $0x8] sm:$0xff]  ;;  %v24_v1 = vld [vmem:[%s444_s1 + $0x18] sm:$0xff]  ;;  %v21_v2 = vld [vmem:[%s444_s1] sm:$0xff]  ;;  %98 = vmatprep.mubr.f32.mxu0 %v328_v7  ;;  %20 = vst.msk [vmem:[#allocation2] sm:$0xff] %vm19_vm0, %v328_v7  ;;  %276 = vmatprep.subr.bf16.mxu1 %v329_v8 }
   0x2   :  { %v268_v3 = vpack.c.bf16 %v24_v1, %v22_v0  ;;  %v23_v4 = vld [vmem:[%s444_s1 + $0x10] sm:$0xff]  ;;  %v26_v5 = vld [vmem:[%s444_s1 + $0x28] sm:$0xff]  ;;  %v28_v6 = vld [vmem:[%s444_s1 + $0x38] sm:$0xff] }
   0x3   :  { %v270_v9 = vpack.c.bf16 %v23_v4, %v21_v2  ;;  %v272_v10 = vpack.c.bf16 %v28_v6, %v26_v5  ;;  %v25_v11 = vld [vmem:[%s444_s1 + $0x20] sm:$0xff]  ;;  %v27_v12 = vld [vmem:[%s444_s1 + $0x30] sm:$0xff]  ;;  %v109_v14 = vld [vmem:[%s445_s2 + $0x8] sm:$0xff] }
   0x4   :  { %269 = vmatprep.subr.bf16.mxu0 %v268_v3  ;;  %v108_v13 = vld [vmem:[%s445_s2] sm:$0xff]  ;;  %v110_v15 = vld [vmem:[%s445_s2 + $0x10] sm:$0xff]  ;;  %v274_v16 = vpack.c.bf16 %v27_v12, %v25_v11  ;;  %v111_v18 = vld [vmem:[%s445_s2 + $0x18] sm:$0xff] }
   0x5   :  { %271 = vmatpush1.bf16.msra.mxu0 %v270_v9  ;;  %v277_v17 = vpack.c.bf16 %v109_v14, %v108_v13  ;;  %v280_v19 = vpack.c.bf16 %v111_v18, %v110_v15  ;;  %v112_v20 = vld [vmem:[%s445_s2 + $0x20] sm:$0xff]  ;;  %v113_v21 = vld [vmem:[%s445_s2 + $0x28] sm:$0xff] }
   0x6   :  { %273 = vmatprep.subr.bf16.mxu0 %v272_v10 }
   0x7   :  { %278 = vmatpush3.bf16.msra.mxu1 %v277_v17 }
   0x8   :  { %279 = vmatprep.subr.bf16.mxu1 %v329_v8 }
   0x9   :  { %8 = vsyncpa [#allocation4], 0  ;;  %275 = vmatpush1.bf16.msra.mxu0 %v274_v16  ;;  %v29_v22 = vld [vmem:[%s443_s0] sm:$0xff]  ;;  %v283_v23 = vpack.c.bf16 %v113_v21, %v112_v20  ;;  %v114_v24 = vld [vmem:[%s445_s2 + $0x30] sm:$0xff]  ;;  %vm330_vm1 = vmmov 0   ;;  %s331_s6 = smov [#allocation3]  }
   0xa   :  { %v115_v25 = vld [vmem:[%s445_s2 + $0x38] sm:$0xff]  ;;  %v116_v27 = vld [vmem:[%s445_s2 + $0x40] sm:$0xff]  ;;  %v117_v28 = vld [vmem:[%s445_s2 + $0x48] sm:$0xff]  ;;  %265 = vmatprep.mubr.msk.f32.mxu1 %vm330_vm1, %v328_v7  ;;  %s207_s7 = sshll.u32 %s331_s6, 4  ;;  %s208_s7 = int_to_ptr.vmem [resolvable:$true] %s207_s7 }
   0xb   :  { %281 = vmatpush3.bf16.msra.mxu1 %v280_v19  ;;  %v286_v26 = vpack.c.bf16 %v115_v25, %v114_v24  ;;  %v289_v29 = vpack.c.bf16 %v117_v28, %v116_v27  ;;  %v118_v30 = vld [vmem:[%s445_s2 + $0x50] sm:$0xff]  ;;  %v119_v31 = vld [vmem:[%s445_s2 + $0x58] sm:$0xff]  ;;  %v120_v33 = vld [vmem:[%s445_s2 + $0x60] sm:$0xff]  ;;  %p309_p1 = scmp.lt.s32.totalorder %s208_s7, %s208_s7 }
   0xc   :  { %215 = vmatmul.mubr.msk.f32.vlgmr.msra.gmra.mrb[0].mxu0 %vm19_vm0, %v29_v22  ;;  %282 = vmatprep.subr.bf16.mxu1 %v329_v8  ;;  %v292_v32 = vpack.c.bf16 %v119_v31, %v118_v30  ;;  %v121_v34 = vld [vmem:[%s445_s2 + $0x68] sm:$0xff]  ;;  %v122_v36 = vld [vmem:[%s445_s2 + $0x70] sm:$0xff]  ;;  %v123_v37 = vld [vmem:[%s445_s2 + $0x78] sm:$0xff]  ;;  %s304_s2 = scalar_lea.vmem %s208_s7, 128 }
   0xd   :  { %v295_v35 = vpack.c.bf16 %v121_v34, %v120_v33  ;;  %v298_v38 = vpack.c.bf16 %v123_v37, %v122_v36  ;;  %v107_v43 = vld [vmem:[#allocation2] sm:$0xff]  ;;  %p305_p0 = scmp.ne.s32.totalorder %s208_s7, %s304_s2  ;;  %p310_p2 = scmp.lt.s32.totalorder %s304_s2, %s304_s2 }
   0xf   :  { %284 = vmatpush3.bf16.msra.mxu1 %v283_v23  ;;  %p311_p3 = por %p310_p2, %p309_p1 }
  0x10   :  { %285 = vmatprep.subr.bf16.mxu1 %v329_v8 }
  0x11   :  { %p312_p4 = pnand %p311_p3, %p305_p0 }
  0x13   :  { %287 = vmatpush3.bf16.msra.mxu1 %v286_v26 }
  0x14   :  { %288 = vmatprep.subr.bf16.mxu1 %v329_v8 }
  0x17   :  { %290 = vmatpush3.bf16.msra.mxu1 %v289_v29 }
  0x18   :  { %291 = vmatprep.subr.bf16.mxu1 %v329_v8 }
  0x1b   :  { %293 = vmatpush3.bf16.msra.mxu1 %v292_v32 }
  0x1c   :  { %294 = vmatprep.subr.bf16.mxu1 %v329_v8 }
  0x1f   :  { %296 = vmatpush3.bf16.msra.mxu1 %v295_v35 }
  0x20   :  { %297 = vmatprep.subr.bf16.mxu1 %v329_v8 }
  0x23   :  { %299 = vmatpush3.bf16.msra.mxu1 %v298_v38 }
  0xdf   :  { %v100_v39 = vpop.f32.mrb[0].mxu0 }
  0xe0   :  { %v105_v40 = vmax.f32 %v100_v39, 0.0  ;;  %v102_v41 = vpop.f32.mrb[1].mxu0 }
  0xe2   :  { %v106_v42 = vmul.f32 %v105_v40, %v102_v41 }
  0xe4   :  { %266 = vmatmul.mubr.f32.vlgmr.msra.gmra.mrb[0].mxu1 %v106_v42 }
 0x1b7   :  { %v190_v44 = vpop.f32.mrb[0].mxu1 }
 0x1b8   :  { %v194_v45 = vadd.f32 %v190_v44, %v107_v43  ;;  %v267_v46 = vpop.f32.mrb[1].mxu1 }
 0x1ba   :  { %195 = vst.msk [vmem:[#allocation2] sm:$0xff] %vm19_vm0, %v194_v45 }
 0x1c1   :  { %v199_v47 = vld [vmem:[#allocation2] sm:$0xff] }
 0x1c2   :  { %200 = vst.msk [vmem:[#allocation3] sm:$0xff] %vm19_vm0, %v199_v47 }
 0x1c3   :  { %315 = shalt.err (!%p312_p4)
}
 0x1c4   :  { %s316_s9 = scalar_lea.hbm %s446_s3, 128 }
 0x1c5   :  { %p317_p5 = scmp.ne.s32.totalorder %s446_s3, %s316_s9  ;;  %p320_p6 = scmp.lt.u32.totalorder %s316_s9, %s446_s3 }
 0x1c7   :  { %p322_p7 = pnand %p320_p6, %p317_p5 }
 0x1c9   :  { %325 = shalt.err (!%p322_p7)
}
 0x1ca   :  { %210 = dma.vmem_to_hbm [thread:$0]  %s208_s7, 128, %s446_s3, [#allocation4]  }
 0x1cb   :  { %326 = dma.done.wait [#allocation4], 128  }
 0x1cc   :  { %327 = vsyncadd [#allocation4], 4294967168 }
 0x1cd   :  { %214 = vsyncpa [#allocation4], 1 }

</bundles_post_ra>
